<compile_context>
chip_gen: v6e
topology: v6e:2x2x1
jax: 0.10.0
libtpu: 0.0.40
codegen_flags: <defaults>
</compile_context>

<pallas_src>
import jax
import jax.numpy as jnp
from jax.experimental import pallas as pl
from jax.experimental.pallas import tpu as pltpu


def _complex_linear_kernel(xr_ref, xi_ref, wrbd_ref, wi_ref, br_ref, out_ref):
    TG, C, PC = xr_ref.shape  # TG packed groups, C rows, PC = P*C lanes (dense)

    # ---- FR = x.real @ W_R^T + b_R  (Linear over the last dim) --------------
    sublane = 32 // jnp.dtype(xr_ref.dtype).itemsize   # 8 for f32, 16 for bf16
    if C % sublane == 0:
        # Layout-free flatten of the leading dims: one big lane-dense
        # [TG*C, PC] x [PC, PC] GEMM against the block-diagonal W_R^T.
        fr = jnp.dot(xr_ref[...].reshape(TG * C, PC), wrbd_ref[...],
                     preferred_element_type=jnp.float32).reshape(TG, C, PC)
    else:
        # Fallback for C not sublane-aligned: batched form (no reshape).
        wr_b = jnp.broadcast_to(wrbd_ref[...][None], (TG, PC, PC))
        fr = jax.lax.dot_general(
            xr_ref[...], wr_b,
            dimension_numbers=(((2,), (1,)), ((0,), (0,))),
            preferred_element_type=jnp.float32)
    fr = fr + br_ref[...]                    # [1, PC] f32 bias broadcasts

    # ---- FI = W_I @ x.imag  (VNLinear over the second-to-last dim) ----------
    # Batched left-multiply: W_I broadcast over the packed-group dim, contract
    # the sublane (k) dim — no transposes/relayouts needed.
    wi_b = jnp.broadcast_to(wi_ref[...][None], (TG, C, C))
    fi = jax.lax.dot_general(
        wi_b, xi_ref[...],
        dimension_numbers=(((2,), (1,)), ((0,), (0,))),
        preferred_element_type=jnp.float32)

    # bf16 stores (outputs dominate HBM bytes); math above accumulated in f32.
    out_ref[0, ...] = (fr - fi).astype(out_ref.dtype)   # real part
    out_ref[1, ...] = (fr + fi).astype(out_ref.dtype)   # imag part


def _physical_vmem_bytes():
    try:
        info = pltpu.get_tpu_info()
        for name in ("vmem_capacity_bytes", "vmem_size_bytes", "vmem_bytes"):
            v = getattr(info, name, None)
            if v:
                return int(v)
    except Exception:
        pass
    return 64 << 20   # conservative fallback = v7x per-TensorCore VMEM


def complex_linear(x, w_r, b_r, w_i, *, act_dtype=jnp.bfloat16,
                   out_dtype=jnp.bfloat16, tg_max=256):
    """x: complex64 [B, N, C, C]; w_r, w_i: [C, C] ([out, in]); b_r: [C]."""
    B, N, C, C2 = x.shape
    assert C == C2, "ComplexLinear needs square trailing dims (in==out channels)"
    assert w_r.shape == (C, C) and w_i.shape == (C, C) and b_r.shape == (C,)
    M = B * N

    # Lane-packing factor: P batch items share the 128-lane axis when C | 128,
    # so every DMA block / output store is a full 128-wide unmasked vst.
    P = 128 // C if (C <= 128 and 128 % C == 0) else 1
    PC = P * C
    G = -(-M // P)                         # packed groups before tiling

    # ---- tile / grid sizing (generation-aware VMEM budget) -------------------
    act_bytes = jnp.dtype(act_dtype).itemsize
    out_bytes = jnp.dtype(out_dtype).itemsize
    per_tg = (2 * C * PC * act_bytes * 2        # 2 activation inputs, x2 buffers
              + 2 * C * PC * out_bytes * 2      # stacked (2,...) output, x2 buffers
              + 2 * C * PC * 4)                 # f32 fr / fi intermediates
    fixed = (PC * PC + C * C) * act_bytes * 2 + PC * 4 * 2 + (4 << 20)
    budget = min(int(_physical_vmem_bytes() * 0.7), 96 << 20)
    tg_cap = max(1, min(tg_max, (budget - fixed) // per_tg))

    # >= 4 evenly split steps when possible: 2 per TensorCore on v7x megacore,
    # and enough steps for BlockSpec double-buffering to overlap DMA on v5e/v6e.
    steps = max(min(G, 4), -(-G // tg_cap))
    if steps > 1 and steps % 2:
        steps += 1
    TG = -(-G // steps)
    Gp = steps * TG
    Mp = Gp * P

    # ---- pack: real/imag split + single pad + lane pack + bf16 cast ----------
    # All elementwise/copy work; XLA fuses it into one pass feeding the call
    # (allow_input_fusion on the two activation operands).
    # TODO(synk): if xprof shows the lane-pack transpose materializing as a
    # separate HBM pass, feed the un-permuted [G, P, C, C] view and pack
    # in-kernel on the (idle) XLU instead.
    xr = jnp.real(x).reshape(M, C, C)
    xi = jnp.imag(x).reshape(M, C, C)
    if Mp != M:
        pad = ((0, Mp - M), (0, 0), (0, 0))
        xr = jnp.pad(xr, pad)
        xi = jnp.pad(xi, pad)

    def pack(a):
        return (a.reshape(Gp, P, C, C).transpose(0, 2, 1, 3)
                 .reshape(Gp, C, PC).astype(act_dtype))

    xr_p, xi_p = pack(xr), pack(xi)

    # Block-diagonal W_R^T (P copies) keeps the packed FR GEMM lane-dense.
    wrt = jnp.asarray(w_r, jnp.float32).T                          # [k_in, q_out]
    wrbd = (jnp.einsum('ab,kq->akbq', jnp.eye(P, dtype=jnp.float32), wrt)
            .reshape(PC, PC).astype(act_dtype))
    wib = jnp.asarray(w_i, act_dtype)                              # [p_out, k_in]
    brp = jnp.tile(jnp.asarray(b_r, jnp.float32), P).reshape(1, PC)

    act_spec = pl.BlockSpec((TG, C, PC), lambda g: (g, 0, 0))
    vmem_limit = int(max(32 << 20, min(budget, TG * per_tg + fixed)))

    out = pl.pallas_call(
        _complex_linear_kernel,
        out_shape=jax.ShapeDtypeStruct((2, Gp, C, PC), out_dtype),
        grid=(steps,),
        in_specs=[act_spec, act_spec,
                  pl.BlockSpec((PC, PC), lambda g: (0, 0)),
                  pl.BlockSpec((C, C), lambda g: (0, 0)),
                  pl.BlockSpec((1, PC), lambda g: (0, 0))],
        out_specs=pl.BlockSpec((2, TG, C, PC), lambda g: (0, g, 0, 0)),
        compiler_params=pltpu.CompilerParams(
            dimension_semantics=("parallel",),
            vmem_limit_bytes=vmem_limit,
            allow_input_fusion=[True, True, False, False, False]),
    )(xr_p, xi_p, wrbd, wib, brp)

    # Unpack lanes -> batch and reassemble complex64 in one fused epilogue.
    # Keep the [:M] slice: zero-padded groups carry FR = bias (non-zero).
    # TODO(synk): Pallas TPU has no complex dtype; the interleave back to
    # complex64 stays outside the kernel.
    def unpack(o):
        o = o.reshape(Gp, C, P, C).transpose(0, 2, 1, 3).reshape(Mp, C, C)
        return o[:M].astype(jnp.float32)

    out_c = jax.lax.complex(unpack(out[0]), unpack(out[1])).astype(jnp.complex64)
    return out_c.reshape(B, N, C, C)


if __name__ == "__main__":
    # Small, self-consistent shapes: in_channels = out_channels = C.
    B, N, C = 2, 4, 32

    key = jax.random.PRNGKey(0)
    kxr, kxi, kwr, kbr, kwi = jax.random.split(key, 5)

    x_real = jax.random.normal(kxr, (B, N, C, C), jnp.float32)
    x_imag = jax.random.normal(kxi, (B, N, C, C), jnp.float32)
    x = jax.lax.complex(x_real, x_imag).astype(jnp.complex64)

    # Deterministic params mimicking nn.Linear init (uniform +/- 1/sqrt(in)).
    bound = float(C) ** -0.5
    w_r = jax.random.uniform(kwr, (C, C), jnp.float32, -bound, bound)  # FC_R.weight
    b_r = jax.random.uniform(kbr, (C,), jnp.float32, -bound, bound)    # FC_R.bias
    w_i = jax.random.uniform(kwi, (C, C), jnp.float32, -bound, bound)  # FC_I weight

    out = jax.jit(complex_linear)(x, w_r, b_r, w_i)
    jax.block_until_ready(out)

    # Reference: identical math on bf16-rounded operands (kernel feeds the MXU
    # in bf16 with f32 accumulation) and bf16-rounded outputs (kernel stores
    # bf16), so only accumulation order differs.
    rd = lambda a: a.astype(jnp.bfloat16).astype(jnp.float32)
    fr_ref = jnp.einsum('bnpk,qk->bnpq', rd(x_real), rd(w_r),
                        preferred_element_type=jnp.float32) + b_r
    fi_ref = jnp.einsum('pk,bnkq->bnpq', rd(w_i), rd(x_imag),
                        preferred_element_type=jnp.float32)
    ref = jax.lax.complex(rd(fr_ref - fi_ref), rd(fr_ref + fi_ref)).astype(jnp.complex64)

    assert out.shape == (B, N, C, C) and out.dtype == jnp.complex64
    assert jnp.allclose(out, ref, atol=1e-2, rtol=1e-2), \
        float(jnp.max(jnp.abs(out - ref)))
    print("KERNEL_OK")
</pallas_src>

<mosaic_0001>
module attributes {stable_mosaic.version = 11 : i64} {
  func.func @_complex_linear_kernel(%arg0: i32, %arg1: memref<1x32x128xbf16, #tpu.memory_space<vmem>>, %arg2: memref<1x32x128xbf16, #tpu.memory_space<vmem>>, %arg3: memref<128x128xbf16, #tpu.memory_space<vmem>>, %arg4: memref<32x32xbf16, #tpu.memory_space<vmem>>, %arg5: memref<1x128xf32, #tpu.memory_space<vmem>>, %arg6: memref<2x1x32x128xbf16, #tpu.memory_space<vmem>>) attributes {dimension_semantics = [#tpu.dimension_semantics<parallel>], iteration_bounds = array<i64: 2>, scalar_prefetch = 0 : i64, scratch_operands = 0 : i64, tpu.core_type = #tpu.core_type<tc>, window_params = [{transform_indices = @transform_0, window_bounds = array<i64: 1, 32, 128>}, {transform_indices = @transform_1, window_bounds = array<i64: 1, 32, 128>}, {pipeline_mode = #tpu.pipeline_mode<synchronous>, transform_indices = @transform_2, window_bounds = array<i64: 128, 128>}, {pipeline_mode = #tpu.pipeline_mode<synchronous>, transform_indices = @transform_3, window_bounds = array<i64: 32, 32>}, {pipeline_mode = #tpu.pipeline_mode<synchronous>, transform_indices = @transform_4, window_bounds = array<i64: 1, 128>}, {transform_indices = @transform_5, window_bounds = array<i64: 2, 1, 32, 128>}]} {
    %c0 = arith.constant 0 : index
    %c0_0 = arith.constant 0 : index
    %c0_1 = arith.constant 0 : index
    %0 = vector.load %arg1[%c0, %c0_0, %c0_1] : memref<1x32x128xbf16, #tpu.memory_space<vmem>>, vector<1x32x128xbf16>
    %1 = vector.shape_cast %0 : vector<1x32x128xbf16> to vector<32x128xbf16>
    %c0_2 = arith.constant 0 : index
    %c0_3 = arith.constant 0 : index
    %2 = vector.load %arg3[%c0_2, %c0_3] : memref<128x128xbf16, #tpu.memory_space<vmem>>, vector<128x128xbf16>
    %cst = arith.constant dense<0.000000e+00> : vector<32x128xf32>
    %3 = tpu.matmul %1, %2, %cst {dimension_numbers = #tpu.dot_dimension_numbers<[1], [0], [0], [1], [0, 0, 1, 1], [], []>} : vector<32x128xbf16>, vector<128x128xbf16>, vector<32x128xf32> -> vector<32x128xf32>
    %4 = vector.shape_cast %3 : vector<32x128xf32> to vector<1x32x128xf32>
    %c0_4 = arith.constant 0 : index
    %c0_5 = arith.constant 0 : index
    %5 = vector.load %arg5[%c0_4, %c0_5] : memref<1x128xf32, #tpu.memory_space<vmem>>, vector<1x128xf32>
    %6 = vector.shape_cast %5 : vector<1x128xf32> to vector<1x1x128xf32>
    %7 = vector.broadcast %6 : vector<1x1x128xf32> to vector<1x32x128xf32>
    %8 = arith.addf %4, %7 : vector<1x32x128xf32>
    %c0_6 = arith.constant 0 : index
    %c0_7 = arith.constant 0 : index
    %9 = vector.load %arg4[%c0_6, %c0_7] : memref<32x32xbf16, #tpu.memory_space<vmem>>, vector<32x32xbf16>
    %10 = vector.shape_cast %9 : vector<32x32xbf16> to vector<1x32x32xbf16>
    %c0_8 = arith.constant 0 : index
    %c0_9 = arith.constant 0 : index
    %c0_10 = arith.constant 0 : index
    %11 = vector.load %arg2[%c0_8, %c0_9, %c0_10] : memref<1x32x128xbf16, #tpu.memory_space<vmem>>, vector<1x32x128xbf16>
    %cst_11 = arith.constant dense<0.000000e+00> : vector<1x32x128xf32>
    %12 = tpu.matmul %10, %11, %cst_11 {dimension_numbers = #tpu.dot_dimension_numbers<[2], [1], [1], [2], [0, 0, 0, 1, 1, 2], [0], [0]>} : vector<1x32x32xbf16>, vector<1x32x128xbf16>, vector<1x32x128xf32> -> vector<1x32x128xf32>
    %13 = arith.subf %8, %12 : vector<1x32x128xf32>
    %14 = arith.truncf %13 : vector<1x32x128xf32> to vector<1x32x128xbf16>
    %c0_12 = arith.constant 0 : index
    %c0_13 = arith.constant 0 : index
    %c0_14 = arith.constant 0 : index
    %c0_15 = arith.constant 0 : index
    %15 = vector.load %arg6[%c0_12, %c0_13, %c0_14, %c0_15] : memref<2x1x32x128xbf16, #tpu.memory_space<vmem>>, vector<1x1x32x128xbf16>
    %16 = vector.shape_cast %15 : vector<1x1x32x128xbf16> to vector<1x32x128xbf16>
    %17 = vector.shape_cast %14 : vector<1x32x128xbf16> to vector<1x1x32x128xbf16>
    tpu.vector_store %arg6[%c0_12, %c0_13, %c0_14, %c0_15], %17 {strides = array<i32>} : memref<2x1x32x128xbf16, #tpu.memory_space<vmem>>, vector<1x1x32x128xbf16>,
    %18 = arith.addf %8, %12 : vector<1x32x128xf32>
    %19 = arith.truncf %18 : vector<1x32x128xf32> to vector<1x32x128xbf16>
    %c1 = arith.constant 1 : index
    %c0_16 = arith.constant 0 : index
    %c0_17 = arith.constant 0 : index
    %c0_18 = arith.constant 0 : index
    %20 = vector.load %arg6[%c1, %c0_16, %c0_17, %c0_18] : memref<2x1x32x128xbf16, #tpu.memory_space<vmem>>, vector<1x1x32x128xbf16>
    %21 = vector.shape_cast %20 : vector<1x1x32x128xbf16> to vector<1x32x128xbf16>
    %22 = vector.shape_cast %19 : vector<1x32x128xbf16> to vector<1x1x32x128xbf16>
    tpu.vector_store %arg6[%c1, %c0_16, %c0_17, %c0_18], %22 {strides = array<i32>} : memref<2x1x32x128xbf16, #tpu.memory_space<vmem>>, vector<1x1x32x128xbf16>,
    return
  }
  func.func @transform_0(%arg0: i32) -> (i32, i32, i32) {
    %c0_i32 = arith.constant 0 : i32
    %c0_i32_0 = arith.constant 0 : i32
    %c0_i32_1 = arith.constant 0 : i32
    return %arg0, %c0_i32, %c0_i32_0 : i32, i32, i32
  }
  func.func @transform_1(%arg0: i32) -> (i32, i32, i32) {
    %c0_i32 = arith.constant 0 : i32
    %c0_i32_0 = arith.constant 0 : i32
    %c0_i32_1 = arith.constant 0 : i32
    return %arg0, %c0_i32, %c0_i32_0 : i32, i32, i32
  }
  func.func @transform_2(%arg0: i32) -> (i32, i32) {
    %c0_i32 = arith.constant 0 : i32
    %c0_i32_0 = arith.constant 0 : i32
    %c0_i32_1 = arith.constant 0 : i32
    return %c0_i32, %c0_i32_0 : i32, i32
  }
  func.func @transform_3(%arg0: i32) -> (i32, i32) {
    %c0_i32 = arith.constant 0 : i32
    %c0_i32_0 = arith.constant 0 : i32
    %c0_i32_1 = arith.constant 0 : i32
    return %c0_i32, %c0_i32_0 : i32, i32
  }
  func.func @transform_4(%arg0: i32) -> (i32, i32) {
    %c0_i32 = arith.constant 0 : i32
    %c0_i32_0 = arith.constant 0 : i32
    %c0_i32_1 = arith.constant 0 : i32
    return %c0_i32, %c0_i32_0 : i32, i32
  }
  func.func @transform_5(%arg0: i32) -> (i32, i32, i32, i32) {
    %c0_i32 = arith.constant 0 : i32
    %c0_i32_0 = arith.constant 0 : i32
    %c0_i32_1 = arith.constant 0 : i32
    %c0_i32_2 = arith.constant 0 : i32
    return %c0_i32, %arg0, %c0_i32_0, %c0_i32_1 : i32, i32, i32, i32
  }
}

</mosaic_0001>

<bundles_post_ra>
// kernel: tile.8
= control target key start
LH: loop header
LB: loop body
LE: loop exit
PB: predicated region body
PF: predicated region fallthrough
CT: control target
= control target key end

     0   :  { %s22_s0 = inlined_call_operand.vmem [shape: f32[32], index: 0, kind: input, shape index: {}]   ;;  %s23_s1 = inlined_call_operand.vmem [shape: f32[4,32], index: 1, kind: output, shape index: {}]  }
   0x1   :  { %v4_v0 = vld [vmem:[%s22_s0] ss:$0 sm:$0xff] }
   0x2   :  { %5 = vst [vmem:[%s23_s1] sm:$0xf] %v4_v0 }

// kernel: tile.9
= control target key start
LH: loop header
LB: loop body
LE: loop exit
PB: predicated region body
PF: predicated region fallthrough
CT: control target
= control target key end

     0   :  { %vm8_vm0 = vcmask 261120   ;;  %s40_s8 = smov 32   ;;  %s41_s9 = smov 64   ;;  %vm14_vm1 = vcmask 1048320   ;;  %vm20_vm2 = vcmask 785920   ;;  %vm26_vm3 = vcmask 523520   ;;  %s58_s0 = inlined_call_operand.vmem [shape: f32[4,32], index: 0, kind: input, shape index: {}]   ;;  %s59_s1 = inlined_call_operand.vmem [shape: f32[1,128], index: 1, kind: output, shape index: {}]  }
   0x1   :  { %v5_v0 = vld [vmem:[%s58_s0] sm:$0xf]  ;;  %s39_s0 = smov 96  }
   0x2   :  { %6 = vst [vmem:[#allocation1] sm:$0xf] %v5_v0 }
   0x9   :  { %v11_v1 = vld [vmem:[#allocation1 + $0x3] sm:$0x1]   ;;  %v23_v2 = vld [vmem:[#allocation1 + $0x1] sm:$0x1]   ;;  %v7_v3 = vld [vmem:[#allocation1] sm:$0x1]  }
   0xa   :  { %12 = vrot.lane.b32.xlu0 %v11_v1, %s39_s0  ;;  %24 = vrot.lane.b32.xlu1 %v23_v2, %s40_s8  ;;  %v17_v4 = vld [vmem:[#allocation1 + $0x2] sm:$0x1]   ;;  %9 = vst.msk [vmem:[#allocation0] sm:$0x1] %vm8_vm0, %v7_v3  }
   0xe   :  { %18 = vrot.lane.b32.xlu0 %v17_v4, %s41_s9 }
  0x7c   :  { %v13_v5 = vpop.permute.xlu0 %12   ;;  %v25_v6 = vpop.permute.xlu1 %24  }
  0x7d   :  { %15 = vst.msk [vmem:[#allocation0] sm:$0x1] %vm14_vm1, %v13_v5  }
  0x80   :  { %v19_v7 = vpop.permute.xlu0 %18  }
  0x81   :  { %21 = vst.msk [vmem:[#allocation0] sm:$0x1] %vm20_vm2, %v19_v7  }
  0x82   :  { %27 = vst.msk [vmem:[#allocation0] sm:$0x1] %vm26_vm3, %v25_v6  }
  0x89   :  { %v32_v8 = vld [vmem:[#allocation0] sm:$0x1] }
  0x8a   :  { %35 = vst [vmem:[%s59_s1] sm:$0x1] %v32_v8 }

// kernel: custom-call.1
= control target key start
LH: loop header
LB: loop body
LE: loop exit
PB: predicated region body
PF: predicated region fallthrough
CT: control target
= control target key end

     0   :  { %s51_s0 = inlined_call_operand.hbm [shape: c64[2,4,32,32], index: 0, kind: input, shape index: {}]   ;;  %s52_s1 = inlined_call_operand.vmem [shape: f32[2,4,32,32], index: 1, kind: output, shape index: {}]  }
   0x1   :  { %s2_s8 = scalar_lea.hbm %s51_s0, 4096 }
   0x2   :  { %3 = vsyncpa [#allocation0], 0  ;;  %s4_s11 = sshll.u32 %s52_s1, 4  ;;  %s5_s11 = int_to_ptr.vmem [resolvable:$true] %s4_s11 }
   0x3   :  { %s20_s12 = scalar_lea.vmem %s5_s11, 4096  ;;  %p25_p1 = scmp.lt.s32.totalorder %s5_s11, %s5_s11 }
   0x4   :  { %p21_p0 = scmp.ne.s32.totalorder %s5_s11, %s20_s12  ;;  %p26_p2 = scmp.lt.s32.totalorder %s20_s12, %s20_s12 }
   0x6   :  { %p27_p3 = por %p26_p2, %p25_p1 }
   0x8   :  { %p28_p4 = pnand %p27_p3, %p21_p0 }
   0xa   :  { %31 = shalt.err (!%p28_p4)  }
   0xb   :  { %7 = dma.hbm_to_vmem [thread:$0]  %s2_s8, 4096, %s5_s11, [#allocation0] }
   0xc   :  { %33 = dma.done.wait [#allocation0], 4096  }
   0xd   :  { %34 = vsyncadd [#allocation0], 4294963200 }
   0xe   :  { %9 = vsyncpa [#allocation0], 1 }

// kernel: custom-call
= control target key start
LH: loop header
LB: loop body
LE: loop exit
PB: predicated region body
PF: predicated region fallthrough
CT: control target
= control target key end

     0   :  { %2 = vsyncpa [#allocation0], 0  ;;  %s47_s0 = inlined_call_operand.hbm [shape: c64[2,4,32,32], index: 0, kind: input, shape index: {}]   ;;  %s48_s1 = inlined_call_operand.vmem [shape: f32[2,4,32,32], index: 1, kind: output, shape index: {}]  }
   0x1   :  { %s3_s8 = sshll.u32 %s48_s1, 4  ;;  %s4_s8 = int_to_ptr.vmem [resolvable:$true] %s3_s8 }
   0x2   :  { %s17_s9 = scalar_lea.vmem %s4_s8, 4096  ;;  %p22_p1 = scmp.lt.s32.totalorder %s4_s8, %s4_s8 }
   0x3   :  { %p18_p0 = scmp.ne.s32.totalorder %s4_s8, %s17_s9  ;;  %p23_p2 = scmp.lt.s32.totalorder %s17_s9, %s17_s9 }
   0x5   :  { %p24_p3 = por %p23_p2, %p22_p1 }
   0x7   :  { %p25_p4 = pnand %p24_p3, %p18_p0 }
   0x9   :  { %28 = shalt.err (!%p25_p4)  }
   0xa   :  { %6 = dma.hbm_to_vmem [thread:$0]  %s47_s0, 4096, %s4_s8, [#allocation0] }
   0xb   :  { %29 = dma.done.wait [#allocation0], 4096  }
   0xc   :  { %30 = vsyncadd [#allocation0], 4294963200 }
   0xd   :  { %8 = vsyncpa [#allocation0], 1 }

// kernel: custom-call.2
= control target key start
LH: loop header
LB: loop body
LE: loop exit
PB: predicated region body
PF: predicated region fallthrough
CT: control target
= control target key end

     0   :  { %s92_s0 = inlined_call_operand.vmem [shape: f32[2,4,32,32], index: 0, kind: input, shape index: {}]   ;;  %s93_s1 = inlined_call_operand.vmem [shape: f32[2,4,32,32], index: 1, kind: input, shape index: {}]   ;;  %s94_s2 = inlined_call_operand.hbm [shape: c64[2,4,32,32], index: 2, kind: output, shape index: {}]  }
   0x1   :  { %s3_s11 = scalar_lea.hbm %s94_s2, 4096 }
   0x2   :  { %4 = vsyncpa [#allocation0], 0  ;;  %s5_s14 = sshll.u32 %s92_s0, 4  ;;  %s6_s14 = int_to_ptr.vmem [resolvable:$true] %s5_s14 }
   0x3   :  { %s18_s15 = scalar_lea.vmem %s6_s14, 4096  ;;  %p23_p1 = scmp.lt.s32.totalorder %s6_s14, %s6_s14 }
   0x4   :  { %p19_p0 = scmp.ne.s32.totalorder %s6_s14, %s18_s15  ;;  %p24_p2 = scmp.lt.s32.totalorder %s18_s15, %s18_s15 }
   0x6   :  { %p25_p3 = por %p24_p2, %p23_p1 }
   0x8   :  { %p26_p4 = pnand %p25_p3, %p19_p0 }
   0xa   :  { %29 = shalt.err (!%p26_p4)  }
   0xb   :  { %8 = dma.vmem_to_hbm [thread:$0]  %s6_s14, 4096, %s94_s2, [#allocation0] }
   0xc   :  { %61 = dma.done.wait [#allocation0], 4096  }
   0xd   :  { %62 = vsyncadd [#allocation0], 4294963200 }
   0xe   :  { %10 = vsyncpa [#allocation0], 1 }
   0xf   :  { %11 = vsyncpa [#allocation1], 0  ;;  %s12_s0 = sshll.u32 %s93_s1, 4  ;;  %s13_s0 = int_to_ptr.vmem [resolvable:$true] %s12_s0 }
  0x10   :  { %s38_s20 = scalar_lea.vmem %s13_s0, 4096  ;;  %p43_p6 = scmp.lt.s32.totalorder %s13_s0, %s13_s0 }
  0x11   :  { %p39_p5 = scmp.ne.s32.totalorder %s13_s0, %s38_s20  ;;  %p44_p7 = scmp.lt.s32.totalorder %s38_s20, %s38_s20 }
  0x13   :  { %p45_p8 = por %p44_p7, %p43_p6 }
  0x15   :  { %p46_p9 = pnand %p45_p8, %p39_p5 }
  0x17   :  { %49 = shalt.err (!%p46_p9)  }
  0x18   :  { %15 = dma.vmem_to_hbm [thread:$0]  %s13_s0, 4096, %s3_s11, [#allocation1] }
  0x19   :  { %63 = dma.done.wait [#allocation1], 4096  }
  0x1a   :  { %64 = vsyncadd [#allocation1], 4294963200 }
  0x1b   :  { %17 = vsyncpa [#allocation1], 1 }

// kernel: complex_linear.1
= control target key start
LH: loop header
LB: loop body
LE: loop exit
PB: predicated region body
PF: predicated region fallthrough
CT: control target
= control target key end

     0   :  { %s868_s18 = smov 0   ;;  %s870_s19 = smov 0   ;;  %s957_s0 = inlined_call_operand.vmem [shape: bf16[2,32,128], index: 0, kind: input, shape index: {}]   ;;  %s958_s1 = inlined_call_operand.vmem [shape: bf16[2,32,128], index: 1, kind: input, shape index: {}]   ;;  %s959_s2 = inlined_call_operand.vmem [shape: bf16[128,128], index: 2, kind: input, shape index: {}]   ;;  %s960_s3 = inlined_call_operand.vmem [shape: bf16[32,32], index: 3, kind: input, shape index: {}]   ;;  %s961_s4 = inlined_call_operand.vmem [shape: f32[1,128], index: 4, kind: input, shape index: {}]   ;;  %s962_s5 = inlined_call_operand.vmem [shape: bf16[2,2,32,128], index: 5, kind: output, shape index: {}]  }
   0x1   :  { %s872_s20 = smov 0  }
   0x2 LB: > { %s881_s21 = sadd.s32 4294967295, %s836_s20   ;;  %s883_s22 = sadd.s32 1, %s836_s20   ;;  %s836_s20 = sphi %s872_s20, %s966_s20   ;;  %s832_s19 = sphi %s870_s19, %s965_s19   ;;  %s828_s18 = sphi %s868_s18, %s964_s18  }
   0x3   : > { %s134_s23 = ssub.s32 %s836_s20, %s883_s22  ;;  %s137_s24 = sadd.s32 1, %s832_s19 }
   0x4   : > { %p135_p0 = scmp.eq.s32.totalorder %s134_s23, 0  ;;  %p147_p1 = scmp.ne.s32.totalorder %s832_s19, %s828_s18 }
   0x5   : > { %p148_p2 = scmp.eq.s32.totalorder %s881_s21, 1  ;;  %p660_p3 = scmp.ge.s32.totalorder %s836_s20, 1 }
   0x6   : > { %s891_s25 = scalar_select %p135_p0, %s832_s19, %s137_s24  }
   0x7   : > { %p893_p4 = por %p148_p2, %p147_p1  ;;  %p197_p5 = scmp.lt.s32.totalorder %s836_s20, 3 }
   0x9   : > { %p198_p6 = pnand %p660_p3, %p197_p5 }
   0xa   : > { %p229_p7 = scmp.lt.s32.totalorder (!%p198_p6), %s881_s21, 1  ;;  %s226_s13 = sand.u32 (!%p198_p6), 1, %s828_s18  }
   0xb   : > { %201 = sbr.rel (%p198_p6) target bundleno = 263 (0x107), region = 40  ;;  %s661_s14 = sshll.u32 (!%p198_p6), %s226_s13, 5 }
   0xc   : > { %s228_s15 = scalar_lea.vmem (!%p198_p6), [#allocation2], %s661_s14 }
  0x10   : > { %v800_v0 = vld [vmem:[%s959_s2 + $0x38] sm:$0xff]   ;;  %v801_v1 = vld [vmem:[%s959_s2 + $0x30] sm:$0xff]   ;;  %s230_s6 = scalar_select %p229_p7, %s881_s21, 1  ;;  %v802_v2 = vld [vmem:[%s959_s2 + $0x28] sm:$0xff]   ;;  %vm410_vm0 = vcmask 261120  }
  0x11   : > { %748 = vmatprep.subr.bf16.mxu0 %v800_v0  ;;  %v803_v4 = vld [vmem:[%s959_s2 + $0x20] sm:$0xff]   ;;  %v804_v7 = vld [vmem:[%s959_s2 + $0x18] sm:$0xff]   ;;  %v811_v8 = vld [vmem:[%s960_s3 + $0x8] sm:$0xff]   ;;  %s710_s18 = sshll.u32 (%p893_p4), %s881_s21, 4 }
  0x12   : > { %749 = vmatpush3.bf16.msra.mxu0 %v800_v0  ;;  %s700_s9 = sshll.u32 %s230_s6, 4  ;;  %v809_v6 = vld [vmem:[%s960_s3] sm:$0xff]   ;;  %v805_v10 = vld [vmem:[%s959_s2 + $0x10] sm:$0xff]   ;;  %v807_v11 = vld [vmem:[%s959_s2 + $0x8] sm:$0xff]   ;;  %s524_s20 = scalar_lea.vmem (%p893_p4), %s962_s5, %s710_s18 }
  0x13   : > { %750 = vmatprep.subr.bf16.mxu0 %v801_v1  ;;  %s238_s12 = scalar_lea.vmem %s958_s1, %s700_s9  ;;  %s233_s23 = scalar_lea.vmem %s957_s0, %s700_s9  ;;  %772 = vmatprep.mubr.msk.bf16.mxu1 %vm410_vm0, %v809_v6  ;;  %v810_v12 = vld [vmem:[%s959_s2] sm:$0xff]  }
  0x14   : > { %v806_v3 = vld [vmem:[%s238_s12 + $0x8] sm:$0xff]   ;;  %v808_v5 = vld [vmem:[%s238_s12] sm:$0xff]  }
  0x15   : > { %768 = vmatprep.subr.bf16.mxu1 %v806_v3  ;;  %v812_v9 = vld [vmem:[%s233_s23] sm:$0xff]   ;;  %v813_v13 = vld [vmem:[%s233_s23 + $0x8] sm:$0xff]  }
  0x16   : > { %751 = vmatpush3.bf16.msra.mxu0 %v801_v1  ;;  %769 = vmatpush3.bf16.msra.mxu1 %v806_v3  ;;  %v676_v15 = vld [vmem:[%s961_s4] ss:$0 sm:$0xff] }
  0x17   : > { %752 = vmatprep.subr.bf16.mxu0 %v802_v2  ;;  %770 = vmatprep.subr.bf16.mxu1 %v808_v5 }
  0x18   : > { %764 = vmatprep.mubr.bf16.mxu0 %v812_v9 }
  0x1a   : > { %753 = vmatpush3.bf16.msra.mxu0 %v802_v2  ;;  %771 = vmatpush3.bf16.msra.mxu1 %v808_v5 }
  0x1b   : > { %754 = vmatprep.subr.bf16.mxu0 %v803_v4 }
  0x1d   : > { %773 = vmatmul.mubr.msk.bf16.vlgmr.msra.gmra.mxu1 %vm410_vm0, %v811_v8 }
  0x1e   : > { %755 = vmatpush3.bf16.msra.mxu0 %v803_v4 }
  0x1f   : > { %756 = vmatprep.subr.bf16.mxu0 %v804_v7 }
  0x22   : > { %757 = vmatpush3.bf16.msra.mxu0 %v804_v7 }
  0x23   : > { %758 = vmatprep.subr.bf16.mxu0 %v805_v10 }
  0x26   : > { %759 = vmatpush3.bf16.msra.mxu0 %v805_v10 }
  0x27   : > { %760 = vmatprep.subr.bf16.mxu0 %v807_v11 }
  0x2a   : > { %761 = vmatpush3.bf16.msra.mxu0 %v807_v11 }
  0x2b   : > { %762 = vmatprep.subr.bf16.mxu0 %v810_v12 }
  0x2e   : > { %763 = vmatpush3.bf16.msra.mxu0 %v810_v12 }
  0x31   : > { %765 = vmatmul.mubr.bf16.vlgmr.msra.gmra.mxu0 %v813_v13 }
  0xdd   : > { %v774_v14 = vpop.f32.mrf.mxu1 }
  0xdf   : > { %v451_v16 = vpop.f32.mrf.mxu1 }
  0xe1   : > { %v775_v20 = vpop.f32.mrf.mxu1 }
  0xe3   : > { %v454_v32 = vpop.f32.mrf.mxu1 }
  0xf1   : > { %v766_v17 = vpop.f32.mrf.mxu0 }
  0xf2   : > { %v378_v18 = vadd.f32 %v766_v17, %v676_v15 }
  0xf3   : > { %v354_v19 = vpop.f32.mrf.mxu0 }
  0xf4   : > { %v376_v21 = vadd.f32 %v676_v15, %v354_v19  ;;  %v468_v24 = vsub.f32 %v378_v18, %v774_v14  ;;  %v492_v26 = vadd.f32 %v774_v14, %v378_v18 }
  0xf5   : > { %v767_v22 = vpop.f32.mrf.mxu0 }
  0xf6   : > { %v379_v23 = vadd.f32 %v767_v22, %v676_v15  ;;  %v466_v30 = vsub.f32 %v376_v21, %v451_v16  ;;  %v490_v31 = vadd.f32 %v451_v16, %v376_v21 }
  0xf7   : > { %v357_v25 = vpop.f32.mrf.mxu0 }
  0xf8   : > { %v469_v27 = vsub.f32 %v379_v23, %v775_v20  ;;  %v493_v28 = vadd.f32 %v775_v20, %v379_v23  ;;  %v377_v29 = vadd.f32 %v676_v15, %v357_v25 }
  0xfa   : > { %v719_v33 = vpack.c.bf16 %v469_v27, %v468_v24  ;;  %v729_v34 = vpack.c.bf16 %v493_v28, %v492_v26  ;;  %v467_v35 = vsub.f32 %v377_v29, %v454_v32  ;;  %v491_v36 = vadd.f32 %v454_v32, %v377_v29  ;;  %521 = sbr.rel (!%p893_p4) target bundleno = 263 (0x107), region = 44 }
  0xfc   : > { %731 = vst [vmem:[%s228_s15 + $0x8] sm:$0xff] %v719_v33   ;;  %733 = vst [vmem:[%s228_s15 + $0x18] sm:$0xff] %v729_v34   ;;  %v714_v37 = vpack.c.bf16 %v467_v35, %v466_v30  ;;  %v724_v38 = vpack.c.bf16 %v491_v36, %v490_v31 }
  0xfe   : > { %715 = vst [vmem:[%s228_s15] sm:$0xff] %v714_v37   ;;  %732 = vst [vmem:[%s228_s15 + $0x10] sm:$0xff] %v724_v38  }
 0x103   : > { %v545_v40 = vld [vmem:[%s228_s15 + $0x8] sm:$0xff]   ;;  %v553_v42 = vld [vmem:[%s228_s15 + $0x18] sm:$0xff]  }
 0x104   : > { %546 = vst [vmem:[%s524_s20 + $0x8] sm:$0xff] %v545_v40   ;;  %554 = vst [vmem:[%s524_s20 + $0x28] sm:$0xff] %v553_v42  }
 0x105   : > { %v541_v39 = vld [vmem:[%s228_s15] sm:$0xff]   ;;  %v549_v41 = vld [vmem:[%s228_s15 + $0x10] sm:$0xff]  }
 0x106   : > { %542 = vst [vmem:[%s524_s20] sm:$0xff] %v541_v39   ;;  %550 = vst [vmem:[%s524_s20 + $0x20] sm:$0xff] %v549_v41  }
 0x107 PF: > { %p12_p8 = scmp.ge.s32.totalorder %s883_s22, 4   ;;  %s964_s18 = smov %s832_s19 }
 0x108   : > { %s965_s19 = smov %s891_s25  ;;  %s966_s20 = smov %s883_s22 }
 0x109   :  { %14 = sbr.rel (!%p12_p8) target bundleno = 2 (0x2), region = 115 }

</bundles_post_ra>
